<compile_context>
chip_gen: v7x
topology: tpu7x:2x2x1
jax: 0.10.0
libtpu: 0.0.40
codegen_flags: <defaults>
</compile_context>

<pallas_src>
import math

import jax
import jax.numpy as jnp
from jax.experimental import pallas as pl
from jax.experimental.pallas import tpu as pltpu


def _round_up(x, m):
    return ((x + m - 1) // m) * m


def _cdiv(a, b):
    return (a + b - 1) // b


def _embedding_kernel(idx_ref, emb_ref, out_ref):
    # idx_ref: (block_rows, 128) int32, VMEM   -- fully packed token tile
    # emb_ref: (V, D) float32, SMEM            -- tiny table, scalar reads
    # out_ref: (D, block_rows, 128) float32, VMEM -- lane+sublane dense slabs
    idx = idx_ref[...]                              # (block_rows, 128)
    v_total, d_total = emb_ref.shape                # static (3, 2)

    # Hoist the V compares out of the d-loop: compute masks once, reuse.
    masks = [idx == v for v in range(v_total)]      # 3 VPU compares total

    for d in range(d_total):                        # unrolled, D = 2
        acc = jnp.zeros(idx.shape, jnp.float32)
        for v in range(v_total):                    # unrolled, V = 3
            # VPU select against a scalar table entry from SMEM.
            # Out-of-range / negative indices fall through to 0.0.
            acc = jnp.where(masks[v], emb_ref[v, d], acc)
        # Direct full-width store of the feature slab (no concatenate).
        out_ref[d, :, :] = acc


def dyn_embedding_lookup(x_idx, emb_table, *, block_rows=2048,
                         min_kernel_tokens=4096, force_kernel=False):
    """x_idx: integer array of any shape, emb_table: (V, D) float32.

    Returns emb_table[x_idx] with shape x_idx.shape + (D,).
    """
    orig_shape = x_idx.shape
    n = math.prod(orig_shape) if orig_shape else 1      # static, no device sync
    v, d = emb_table.shape

    # Small-N fast path: pallas_call fixed cost (grid setup, DMA descriptors,
    # launch) dwarfs a tiny gather; plain XLA indexing wins below a few K tokens.
    if n < min_kernel_tokens and not force_kernel:
        return jnp.take(emb_table, x_idx.astype(jnp.int32), axis=0)

    # Tokens laid out as (rows, 128): lane-dense AND sublane-dense tiles.
    rows = _cdiv(n, 128)
    block_rows = _round_up(max(8, block_rows), 8)
    block_rows = min(block_rows, _round_up(rows, 8))
    rows_pad = _round_up(rows, block_rows)
    n_pad = rows_pad * 128

    idx_flat = x_idx.reshape(-1).astype(jnp.int32)
    if n_pad != n:
        idx_flat = jnp.pad(idx_flat, (0, n_pad - n))     # pad slots sliced off below
    idx_2d = idx_flat.reshape(rows_pad, 128)

    out = pl.pallas_call(
        _embedding_kernel,
        out_shape=jax.ShapeDtypeStruct((d, rows_pad, 128), jnp.float32),
        grid=(rows_pad // block_rows,),
        in_specs=[
            # packed (block_rows, 128) index tile
            pl.BlockSpec((block_rows, 128), lambda i: (i, 0)),
            # whole (3, 2) table in SMEM, scalar-indexed
            pl.BlockSpec(memory_space=pltpu.MemorySpace.SMEM),
        ],
        # (D, block_rows, 128) output slab: full-width unmasked stores,
        # contiguous output DMA.
        out_specs=pl.BlockSpec((d, block_rows, 128), lambda i: (0, i, 0)),
        compiler_params=pltpu.CompilerParams(
            dimension_semantics=("parallel",)),
    )(idx_2d, emb_table)

    # (D, rows_pad, 128) -> (D, N) -> drop padding -> (N, D) -> x.shape + (D,)
    # TODO(synk): when fused into a larger pipeline, hand the lane-dense
    # (D, rows, 128) slab to the consumer directly and skip this transpose pass.
    return out.reshape(d, n_pad)[:, :n].T.reshape(*orig_shape, d)


class PallasModel:
    """Mirror of the PyTorch Model: forward(x) == emb1.emb(x) (embedding lookup)."""

    def __init__(self, key):
        k_emb, k_emb1, k_lin_w, k_lin_b = jax.random.split(key, 4)
        # Deterministic synthetic parameters (shapes from the PyTorch __init__).
        # Model.emb / Model.emb1.emb: DynEmbedding(3, opt, 2) -> (3, 2) table.
        self.emb_table = jax.random.uniform(k_emb, (3, 2), jnp.float32)
        self.emb1_table = jax.random.uniform(k_emb1, (3, 2), jnp.float32)
        # nn.Linear(2, 2) params exist in the module but are unused in forward.
        self.linear_w = jax.random.uniform(k_lin_w, (2, 2), jnp.float32)
        self.linear_b = jax.random.uniform(k_lin_b, (2,), jnp.float32)
        # TODO(synk): SGD optimizer state from __init__ is training-only; not modeled.

    def forward(self, x):
        # Model.forward -> SubModel.forward -> DynEmbedding lookup on emb1's table.
        return dyn_embedding_lookup(x, self.emb1_table)


if __name__ == "__main__":
    key = jax.random.PRNGKey(0)
    k_params, k_idx_small, k_idx_big = jax.random.split(key, 3)

    model = PallasModel(k_params)

    # --- 1) Module-sized input: batch=2, seq=8, values in [0, 3).  Uses the
    #        small-N fast path (plain gather), matching forward() semantics.
    x_small = jax.random.randint(k_idx_small, (2, 8), 0, 3, dtype=jnp.int32)
    out_small = jax.block_until_ready(model.forward(x_small))
    ref_small = model.emb1_table[x_small]
    assert out_small.shape == (2, 8, 2), out_small.shape
    assert jnp.allclose(out_small, ref_small, atol=1e-6), "small-path mismatch"

    # --- 2) Exercise the Pallas kernel path (forced), including padding and a
    #        multi-step grid: 37*250 = 9250 tokens, block_rows=16 -> grid of 5.
    x_big = jax.random.randint(k_idx_big, (37, 250), 0, 3, dtype=jnp.int32)
    out_big = dyn_embedding_lookup(x_big, model.emb1_table,
                                   block_rows=16, force_kernel=True)
    out_big = jax.block_until_ready(out_big)
    ref_big = model.emb1_table[x_big]
    assert out_big.shape == (37, 250, 2), out_big.shape
    assert jnp.allclose(out_big, ref_big, atol=1e-6), "kernel-path mismatch"

    print("KERNEL_OK")
</pallas_src>

<mosaic_0001>
module attributes {stable_mosaic.version = 11 : i64} {
  func.func @_embedding_kernel(%arg0: i32, %arg1: memref<16x128xi32, #tpu.memory_space<vmem>>, %arg2: memref<3x2xf32, #tpu.memory_space<smem>>, %arg3: memref<2x16x128xf32, #tpu.memory_space<vmem>>) attributes {dimension_semantics = [#tpu.dimension_semantics<parallel>], iteration_bounds = array<i64: 5>, scalar_prefetch = 0 : i64, scratch_operands = 0 : i64, tpu.core_type = #tpu.core_type<tc>, window_params = [{transform_indices = @transform_0, window_bounds = array<i64: 16, 128>}, {transform_indices = @transform_1, window_bounds = array<i64: 3, 2>}, {transform_indices = @transform_2, window_bounds = array<i64: 2, 16, 128>}]} {
    %c0 = arith.constant 0 : index
    %c0_0 = arith.constant 0 : index
    %0 = vector.load %arg1[%c0, %c0_0] : memref<16x128xi32, #tpu.memory_space<vmem>>, vector<16x128xi32>
    %c0_i32 = arith.constant 0 : i32
    %1 = vector.broadcast %c0_i32 : i32 to vector<16x128xi32>
    %2 = arith.cmpi eq, %0, %1 : vector<16x128xi32>
    %c1_i32 = arith.constant 1 : i32
    %3 = vector.broadcast %c1_i32 : i32 to vector<16x128xi32>
    %4 = arith.cmpi eq, %0, %3 : vector<16x128xi32>
    %c2_i32 = arith.constant 2 : i32
    %5 = vector.broadcast %c2_i32 : i32 to vector<16x128xi32>
    %6 = arith.cmpi eq, %0, %5 : vector<16x128xi32>
    %cst = arith.constant 0.000000e+00 : f32
    %7 = vector.broadcast %cst : f32 to vector<16x128xf32>
    %c0_1 = arith.constant 0 : index
    %c0_2 = arith.constant 0 : index
    %8 = memref.load %arg2[%c0_1, %c0_2] : memref<3x2xf32, #tpu.memory_space<smem>>
    %9 = vector.broadcast %8 : f32 to vector<16x128xf32>
    %10 = arith.select %2, %9, %7 : vector<16x128xi1>, vector<16x128xf32>
    %c1 = arith.constant 1 : index
    %c0_3 = arith.constant 0 : index
    %11 = memref.load %arg2[%c1, %c0_3] : memref<3x2xf32, #tpu.memory_space<smem>>
    %12 = vector.broadcast %11 : f32 to vector<16x128xf32>
    %13 = arith.select %4, %12, %10 : vector<16x128xi1>, vector<16x128xf32>
    %c2 = arith.constant 2 : index
    %c0_4 = arith.constant 0 : index
    %14 = memref.load %arg2[%c2, %c0_4] : memref<3x2xf32, #tpu.memory_space<smem>>
    %15 = vector.broadcast %14 : f32 to vector<16x128xf32>
    %16 = arith.select %6, %15, %13 : vector<16x128xi1>, vector<16x128xf32>
    %c0_5 = arith.constant 0 : index
    %c0_6 = arith.constant 0 : index
    %c0_7 = arith.constant 0 : index
    %17 = vector.load %arg3[%c0_5, %c0_6, %c0_7] : memref<2x16x128xf32, #tpu.memory_space<vmem>>, vector<1x16x128xf32>
    %18 = vector.shape_cast %17 : vector<1x16x128xf32> to vector<16x128xf32>
    %19 = vector.shape_cast %16 : vector<16x128xf32> to vector<1x16x128xf32>
    tpu.vector_store %arg3[%c0_5, %c0_6, %c0_7], %19 {strides = array<i32>} : memref<2x16x128xf32, #tpu.memory_space<vmem>>, vector<1x16x128xf32>,
    %cst_8 = arith.constant 0.000000e+00 : f32
    %20 = vector.broadcast %cst_8 : f32 to vector<16x128xf32>
    %c0_9 = arith.constant 0 : index
    %c1_10 = arith.constant 1 : index
    %21 = memref.load %arg2[%c0_9, %c1_10] : memref<3x2xf32, #tpu.memory_space<smem>>
    %22 = vector.broadcast %21 : f32 to vector<16x128xf32>
    %23 = arith.select %2, %22, %20 : vector<16x128xi1>, vector<16x128xf32>
    %c1_11 = arith.constant 1 : index
    %c1_12 = arith.constant 1 : index
    %24 = memref.load %arg2[%c1_11, %c1_12] : memref<3x2xf32, #tpu.memory_space<smem>>
    %25 = vector.broadcast %24 : f32 to vector<16x128xf32>
    %26 = arith.select %4, %25, %23 : vector<16x128xi1>, vector<16x128xf32>
    %c2_13 = arith.constant 2 : index
    %c1_14 = arith.constant 1 : index
    %27 = memref.load %arg2[%c2_13, %c1_14] : memref<3x2xf32, #tpu.memory_space<smem>>
    %28 = vector.broadcast %27 : f32 to vector<16x128xf32>
    %29 = arith.select %6, %28, %26 : vector<16x128xi1>, vector<16x128xf32>
    %c1_15 = arith.constant 1 : index
    %c0_16 = arith.constant 0 : index
    %c0_17 = arith.constant 0 : index
    %30 = vector.load %arg3[%c1_15, %c0_16, %c0_17] : memref<2x16x128xf32, #tpu.memory_space<vmem>>, vector<1x16x128xf32>
    %31 = vector.shape_cast %30 : vector<1x16x128xf32> to vector<16x128xf32>
    %32 = vector.shape_cast %29 : vector<16x128xf32> to vector<1x16x128xf32>
    tpu.vector_store %arg3[%c1_15, %c0_16, %c0_17], %32 {strides = array<i32>} : memref<2x16x128xf32, #tpu.memory_space<vmem>>, vector<1x16x128xf32>,
    return
  }
  func.func @transform_0(%arg0: i32) -> (i32, i32) {
    %c0_i32 = arith.constant 0 : i32
    %c0_i32_0 = arith.constant 0 : i32
    return %arg0, %c0_i32 : i32, i32
  }
  func.func @transform_1(%arg0: i32) -> (i32, i32) {
    %c0_i32 = arith.constant 0 : i32
    %c0_i32_0 = arith.constant 0 : i32
    %c0_i32_1 = arith.constant 0 : i32
    return %c0_i32, %c0_i32_0 : i32, i32
  }
  func.func @transform_2(%arg0: i32) -> (i32, i32, i32) {
    %c0_i32 = arith.constant 0 : i32
    %c0_i32_0 = arith.constant 0 : i32
    %c0_i32_1 = arith.constant 0 : i32
    return %c0_i32, %arg0, %c0_i32_0 : i32, i32, i32
  }
}

</mosaic_0001>

<bundles_post_ra>
// kernel: tpu_custom_call.1
= control target key start
LH: loop header
LB: loop body
LE: loop exit
PB: predicated region body
PF: predicated region fallthrough
CT: control target
= control target key end

     0   :  { %7 = vsyncpa [#allocation3], 0  ;;  %s742_s0 = inlined_call_operand.hbm [shape: s32[80,128], index: 0, kind: input, shape index: {}]   ;;  %s743_s1 = inlined_call_operand.vmem [shape: f32[3,2], index: 1, kind: input, shape index: {}]   ;;  %s744_s2 = inlined_call_operand.hbm [shape: f32[2,80,128], index: 2, kind: output, shape index: {}]  }
   0x1   :  { %9 = vsyncpa [#allocation3 + $0x1], 0 }
   0x2   :  { %10 = vsyncpa [#allocation5], 0 }
   0x3   :  { %11 = vsyncpa [#allocation4], 0 }
   0x4   :  { %13 = vsyncpa [#allocation4 + $0x1], 0  ;;  %s555_s9 = smov 0   ;;  %s557_s10 = smov 0  }
   0x5   :  { %s559_s11 = smov 0   ;;  %s561_s12 = smov 0  }
   0x6 LB: > { %s576_s13 = sadd.s32 4294967295, %s527_s12   ;;  %s343_s14 = sadd.s32 4294967294, %s527_s12   ;;  %s527_s12 = sphi %s561_s12, %s763_s12   ;;  %s523_s11 = sphi %s559_s11, %s762_s11   ;;  %s519_s10 = sphi %s557_s10, %s761_s10   ;;  %s515_s9 = sphi %s555_s9, %s760_s9  }
   0x7   : > { %s580_s15 = sadd.s32 1, %s527_s12   ;;  %s26_s16 = sadd.s32 1, %s523_s11 }
   0x8   : > { %s23_s17 = ssub.s32 %s527_s12, %s580_s15  ;;  %p33_p0 = scmp.ne.s32.totalorder %s523_s11, %s519_s10 }
   0x9   : > { %p24_p1 = scmp.eq.s32.totalorder %s23_s17, 0  ;;  %p34_p2 = scmp.eq.s32.totalorder %s527_s12, 0 }
   0xa   : > { %p39_p3 = scmp.ne.s32.totalorder %s519_s10, %s515_s9  ;;  %p746_p4 = scmp.eq.s32.totalorder %s576_s13, 0 }
   0xb   : > { %s592_s18 = scalar_select %p24_p1, %s523_s11, %s26_s16  }
   0xc   : > { %p594_p5 = por %p34_p2, %p33_p0  ;;  %p600_p6 = por %p746_p4, %p39_p3 }
   0xd   : > { %p84_p7 = scmp.eq.s32.totalorder %s576_s13, 4  ;;  %p90_p8 = scmp.eq.s32.totalorder %s343_s14, 4 }
   0xe   : > { %s749_s20 = scalar_select %p600_p6, 1, 0 }
   0xf   : > { %p344_p9 = scmp.ge.s32.totalorder %s527_s12, 1  ;;  %p97_p10 = scmp.lt.s32.totalorder %s527_s12, 6 }
  0x10   : > { %p607_p11 = por %p84_p7, %p33_p0  ;;  %p611_p12 = por %p90_p8, %p39_p3 }
  0x11   : > { %p615_p13 = pnand %p344_p9, %p97_p10  ;;  %s110_s26 = sshll.u32 %s743_s1, 4  ;;  %s111_s26 = int_to_ptr.vmem [resolvable:$true] %s110_s26 }
  0x12   : > { %s750_s21 = scalar_select %p607_p11, 1, 0 }
  0x13   : > { %s751_s22 = scalar_select %p611_p12, 1, 0 }
  0x14   : > { %p382_p1 = pneg %p615_p13  ;;  %p395_p0 = scmp.lt.s32.totalorder %s527_s12, 5 }
  0x15   : > { %s121_s28 = sand.u32 1, %s523_s11   ;;  %s440_s3 = scalar_lea.vmem %s111_s26, 64 }
  0x16   : > { %p627_p2 = pnand %p382_p1, %p746_p4  ;;  %p634_p3 = pnand %p395_p0, %p594_p5 }
  0x17   : > { %s347_s30 = sshll.u32 %s121_s28, 4  ;;  %p441_p7 = scmp.ne.s32.totalorder %s111_s26, %s440_s3 }
  0x18   : > { %p442_p8 = pneg %p627_p2  ;;  %p448_p12 = scmp.lt.s32.totalorder %s111_s26, %s111_s26 }
  0x19   : > { %p449_p11 = scmp.lt.s32.totalorder %s440_s3, %s440_s3 }
  0x1a   : > { %p443_p9 = pnand %p442_p8, %p441_p7 }
  0x1b   : > { %p450_p1 = por %p449_p11, %p448_p12 }
  0x1c   : > { %p444_p10 = pneg %p443_p9 }
  0x1e   : > { %p451_p4 = pnand %p450_p1, %p444_p10 }
  0x20   : > { %454 = shalt.err (!%p451_p4)
}
  0x21   : > { %s529_s4 = smov [#allocation6]   ;;  %s366_s5 = sshll.u32 %s527_s12, 8 }
  0x22   : > { %385 = dma.vmem_to_smem (!%p627_p2), %s111_s26, 64, %s529_s4, [#allocation5]  }
  0x23   : > { %s125_s6 = scalar_lea.vmem [#allocation2], %s347_s30  ;;  %s646_s16 = scalar_lea.hbm %s742_s0, %s366_s5 }
  0x24   : > { %s132_s7 = sshll.u32 %s125_s6, 4  ;;  %s650_s17 = scalar_lea.sflag [#allocation3], %s121_s28  ;;  %s648_s7 = int_to_ptr.vmem [resolvable:$true] %s132_s7 }
  0x25   : > { %s455_s19 = scalar_lea.hbm %s646_s16, 256  ;;  %p457_p5 = pneg %p634_p3 }
  0x26   : > { %p456_p4 = scmp.ne.s32.totalorder %s646_s16, %s455_s19  ;;  %s460_s26 = scalar_lea.hbm %s742_s0, 1280 }
  0x27   : > { %p461_p0 = scmp.lt.u32.totalorder %s646_s16, %s742_s0  ;;  %p462_p2 = scmp.lt.u32.totalorder %s460_s26, %s455_s19 }
  0x28   : > { %p458_p11 = pnand %p457_p5, %p456_p4  ;;  %p464_p8 = scmp.lt.u32.totalorder %s455_s19, %s646_s16 }
  0x29   : > { %p463_p7 = por %p462_p2, %p461_p0 }
  0x2a   : > { %p459_p12 = pneg %p458_p11 }
  0x2b   : > { %p465_p9 = por %p464_p8, %p463_p7 }
  0x2d   : > { %p466_p10 = pnand %p465_p9, %p459_p12 }
  0x2f   : > { %469 = shalt.err (!%p466_p10)
}
  0x30   : > { %s470_s28 = scalar_lea.vmem %s648_s7, 256  ;;  %s530_s3 = smov [#allocation2]  }
  0x31   : > { %p471_p1 = scmp.ne.s32.totalorder %s648_s7, %s470_s28  ;;  %s475_s4 = sshll.u32 %s530_s3, 4  ;;  %s476_s4 = int_to_ptr.vmem [resolvable:$false] %s475_s4 }
  0x32   : > { %s477_s5 = scalar_lea.vmem %s476_s4, 512  ;;  %p478_p6 = scmp.lt.s32.totalorder %s648_s7, %s476_s4 }
  0x33   : > { %p473_p4 = pnand %p471_p1, %p457_p5  ;;  %p479_p0 = scmp.lt.s32.totalorder %s477_s5, %s470_s28 }
  0x35   : > { %p474_p11 = pneg %p473_p4  ;;  %p480_p2 = por %p479_p0, %p478_p6 }
  0x37   : > { %p481_p7 = pnand %p480_p2, %p474_p11 }
  0x39   : > { %484 = shalt.err (!%p481_p7)
}
  0x3a   : > { %s531_s6 = smov 128   ;;  %s532_s8 = smov 8  }
  0x3b   : > { %389 = dma.hbm_to_vmem [thread:$0]  (!%p634_p3), %s646_s16, 256, %s648_s7, %s650_s17, %s531_s6, %s531_s6, %s532_s8  }
  0x3c   : > { %144 = sbr.rel (%p615_p13) target bundleno = 98 (0x62), region = 28  ;;  %s681_s14 = sand.u32 (!%p615_p13), 1, %s519_s10  }
  0x3d   : > { %s351_s19 = sshll.u32 (!%p615_p13), %s681_s14, 4  ;;  %s147_s24 = scalar_lea.sflag (!%p615_p13), [#allocation3], %s681_s14 }
  0x3e   : > { %s150_s25 = scalar_lea.vmem (!%p615_p13), [#allocation2], %s351_s19  ;;  %p755_p6 = scmp.ne.s32.totalorder (!%p615_p13), %s749_s20, 0 }
  0x43   : > { %502 = dma.done.wait (%p755_p6), %s147_s24, 256  }
  0x44   : > { %504 = vsyncadd (%p755_p6), %s147_s24, 4294967040  ;;  %p756_p5 = scmp.eq.s32.totalorder %s576_s13, 0 }
  0x46   : > { %506 = dma.done.wait (%p756_p5), [#allocation5], 64   ;;  %p757_p3 = pmov %p756_p5 }
  0x48   : > { %508 = vsyncadd (%p757_p3), [#allocation5], 4294967232 }
  0x49   : > { %159 = sfence }
  0x4a   : > { %s186_s23 = sld [smem:[#allocation6]]  ;;  %v178_v0 = vld [vmem:[%s150_s25] sm:$0xff]  ;;  %v179_v1 = vld [vmem:[%s150_s25 + $0x8] sm:$0xff]  ;;  %s356_s16 = sld [smem:[#allocation6 + $0x1]] }
  0x4b   : > { %s354_s29 = sld [smem:[#allocation6 + $0x80]]  ;;  %s357_s17 = sld [smem:[#allocation6 + $0x81]]  ;;  %vm180_vm0 = vcmp.eq.s32.totalorder %v178_v0, 0  ;;  %vm181_vm1 = vcmp.eq.s32.totalorder %v179_v1, 0  ;;  %vm182_vm2 = vcmp.eq.s32.totalorder %v178_v0, 1  ;;  %vm183_vm3 = vcmp.eq.s32.totalorder %v179_v1, 1 }
  0x4c   : > { %s355_s7 = sld [smem:[#allocation6 + $0x100]]  ;;  %s353_s26 = sshll.u32 %s681_s14, 5  ;;  %vm184_vm4 = vcmp.eq.s32.totalorder %v178_v0, 2  ;;  %vm185_vm5 = vcmp.eq.s32.totalorder %v179_v1, 2 }
  0x4d   : > { %s358_s20 = sld [smem:[#allocation6 + $0x101]]  ;;  %s175_s27 = scalar_lea.vmem [#allocation7], %s353_s26 }
  0x4e   : > { %s216_s30 = scalar_lea.sflag [#allocation4], %s681_s14 }
  0x50   : > { %v187_v2 = vstv %s186_s23  ;;  %v201_v11 = vstv %s356_s16 }
  0x51   : > { %v188_v3 = vsel %vm180_vm0, %v187_v2, 0.0  ;;  %v191_v4 = vstv %s354_s29  ;;  %v189_v5 = vsel %vm181_vm1, %v187_v2, 0.0  ;;  %v205_v12 = vstv %s357_s17 }
  0x52   : > { %v192_v6 = vsel %vm182_vm2, %v191_v4, %v188_v3  ;;  %v195_v7 = vstv %s355_s7  ;;  %v193_v8 = vsel %vm183_vm3, %v191_v4, %v189_v5  ;;  %v202_v13 = vsel %vm180_vm0, %v201_v11, 0.0 }
  0x53   : > { %v196_v9 = vsel %vm184_vm4, %v195_v7, %v192_v6  ;;  %v197_v10 = vsel %vm185_vm5, %v195_v7, %v193_v8  ;;  %v209_v14 = vstv %s358_s20  ;;  %v203_v15 = vsel %vm181_vm1, %v201_v11, 0.0 }
  0x54   : > { %198 = vst [vmem:[%s175_s27] sm:$0xff] %v196_v9  ;;  %199 = vst [vmem:[%s175_s27 + $0x8] sm:$0xff] %v197_v10  ;;  %v206_v16 = vsel %vm182_vm2, %v205_v12, %v202_v13  ;;  %v207_v17 = vsel %vm183_vm3, %v205_v12, %v203_v15 }
  0x55   : > { %v210_v18 = vsel %vm184_vm4, %v209_v14, %v206_v16  ;;  %v211_v19 = vsel %vm185_vm5, %v209_v14, %v207_v17 }
  0x56   : > { %359 = vst [vmem:[%s175_s27 + $0x10] sm:$0xff] %v210_v18  ;;  %360 = vst [vmem:[%s175_s27 + $0x18] sm:$0xff] %v211_v19 }
  0x57   : > { %s367_s28 = sshll.u32 %s576_s13, 8  ;;  %s245_s3 = sshll.u32 %s175_s27, 4  ;;  %s246_s3 = int_to_ptr.vmem [resolvable:$true] %s245_s3 }
  0x58   : > { %s228_s6 = scalar_lea.hbm %s744_s2, %s367_s28  ;;  %s533_s8 = smov 256  }
  0x59   : > { %p758_p13 = scmp.ne.s32.totalorder %s750_s21, 0  ;;  %s534_s19 = smov 1280  }
  0x5a   : > { %s535_s14 = smov 2   ;;  %s536_s24 = smov 128  }
  0x5b   : > { %374 = sst [smem:[#allocation9]] (%p758_p13), %s533_s8  ;;  %s537_s13 = smov 8  }
  0x5c   : > { %375 = sst [smem:[#allocation9 + $0x1]] (%p758_p13), %s534_s19  ;;  %s538_s25 = smov [#allocation8]  }
  0x5d   : > { %376 = sst [smem:[#allocation9 + $0x2]] (%p758_p13), %s535_s14  ;;  %s539_s23 = smov 0  }
  0x5e   : > { %377 = sst [smem:[#allocation9 + $0x3]] (%p758_p13), %s536_s24 }
  0x5f   : > { %378 = sst [smem:[#allocation9 + $0x4]] (%p758_p13), %s536_s24 }
  0x60   : > { %379 = sst [smem:[#allocation9 + $0x5]] (%p758_p13), %s537_s13 }
  0x61   : > { %380 = dma.general (%p758_p13), %s246_s3, 512, %s228_s6, %s216_s30, %s538_s25, [#allocation9], %s539_s23, 0  }
  0x62 PF: > { %p397_p12 = scmp.ge.s32.totalorder %s527_s12, 2  ;;  %s273_s29 = sand.u32 1, %s515_s9  }
  0x63   : > { %p759_p8 = scmp.ne.s32.totalorder %s751_s22, 0  ;;  %s274_s7 = scalar_lea.sflag [#allocation4], %s273_s29 }
  0x65   : > { %p391_p9 = pnand %p397_p12, %p759_p8 }
  0x67   : > { %510 = dma.done.wait (!%p391_p9), %s274_s7, 512  }
  0x68   : > { %512 = vsyncadd (!%p391_p9), %s274_s7, 4294966784  ;;  %p16_p10 = scmp.ge.s32.totalorder %s580_s15, 7   ;;  %s760_s9 = smov %s519_s10 }
  0x69   : > { %s761_s10 = smov %s523_s11  ;;  %s762_s11 = smov %s592_s18 }
  0x6a   : > { %s763_s12 = smov %s580_s15  ;;  %18 = sbr.rel (!%p16_p10) target bundleno = 6 (0x6), region = 84 }
  0x71   :  { %279 = vsyncpa [#allocation3], 1 }
  0x72   :  { %281 = vsyncpa [#allocation3 + $0x1], 1 }
  0x73   :  { %282 = vsyncpa [#allocation4], 1 }
  0x74   :  { %284 = vsyncpa [#allocation4 + $0x1], 1 }
  0x75   :  { %285 = vsyncpa [#allocation5], 1 }
  0x76   :  { %287 = vsyncpa [#allocation5 + $0x1], 1 }

</bundles_post_ra>
